<compile_context>
chip_gen: v5e
topology: v5e:2x2
jax: 0.10.0
libtpu: 0.0.40
codegen_flags: <defaults>
</compile_context>

<pallas_src>
import jax
import jax.numpy as jnp
from jax import lax
from jax.experimental import pallas as pl
from jax.experimental.pallas import tpu as pltpu


_MASK = -1e30  # large finite negative: avoids inf-inf NaNs in the online softmax


def _intra_attn_kernel(len_ref, q_ref, prev_ref, ctx_ref, m_sc, l_sc, acc_sc):
    # One grid step: (B_TILE) batch rows x (T_TILE) history positions.
    #   len_ref : SMEM (1,) int32        true (un-padded) history length
    #   q_ref   : (B_TILE, 1, H)         pre-projected queries  q = d @ W
    #   prev_ref: (B_TILE, T_TILE, H)    history slab (zero padded)
    #   ctx_ref : (B_TILE, 1, H)         attention context (written on last t step)
    #   m/l/acc : online-softmax running stats, f32 VMEM scratch
    ti = pl.program_id(1)

    @pl.when(ti == 0)
    def _init():
        m_sc[...] = jnp.full_like(m_sc, _MASK)
        l_sc[...] = jnp.zeros_like(l_sc)
        acc_sc[...] = jnp.zeros_like(acc_sc)

    q = q_ref[...]       # input dtype, MXU accumulates in f32
    kv = prev_ref[...]

    # scores for this slab: (B_TILE, 1, T_TILE)
    s = jnp.einsum('bqh,bth->bqt', q, kv, preferred_element_type=jnp.float32)

    # mask padded history positions (>= true length) before the softmax
    t_tile = s.shape[-1]
    pos = ti * t_tile + lax.broadcasted_iota(jnp.int32, s.shape, 2)
    s = jnp.where(pos < len_ref[0], s, _MASK)

    # streaming (online) softmax update
    m_new = jnp.maximum(m_sc[...], jnp.max(s, axis=-1, keepdims=True))
    scale = jnp.exp(m_sc[...] - m_new)
    p = jnp.exp(s - m_new)
    l_sc[...] = scale * l_sc[...] + jnp.sum(p, axis=-1, keepdims=True)
    acc_sc[...] = scale * acc_sc[...] + jnp.einsum(
        'bqt,bth->bqh', p.astype(kv.dtype), kv,
        preferred_element_type=jnp.float32)
    m_sc[...] = m_new

    @pl.when(ti == pl.num_programs(1) - 1)
    def _finalize():
        inv_l = pl.reciprocal(l_sc[...], approx=True)   # EUP slot, ~free
        ctx_ref[...] = (acc_sc[...] * inv_l).astype(ctx_ref.dtype)


def _round_up(x, m):
    return (x + m - 1) // m * m


def intra_decoder_attention(decoder_hidden, previous_hidden, w,
                            *, b_tile=8, t_tile=512):
    """Forward pass matching IntraDecoderAttention.forward.

    decoder_hidden : (1, B, H)   time-major single-step decoder hidden
    previous_hidden: (B, Tp, H)  or None
    w              : (H, H)      nn.Linear(H, H, bias=False).weight (out, in)
    returns (context (1, B, H), new previous_hidden (B, Tp+1, H))
    """
    if previous_hidden is None:
        return (jnp.zeros_like(decoder_hidden),
                jnp.transpose(decoder_hidden, (1, 0, 2)))

    _, B, H = decoder_hidden.shape
    Tp = previous_hidden.shape[1]
    dtype = decoder_hidden.dtype

    d_bf = jnp.transpose(decoder_hidden, (1, 0, 2))                   # (B, 1, H)

    # Hoisted query projection: scores = d @ (prev @ W^T)^T == (d @ W) . prev,
    # so project the single query once for the whole batch; W never enters the
    # kernel.
    q = jnp.einsum('bqh,hk->bqk', d_bf, w,
                   preferred_element_type=jnp.float32).astype(dtype)  # (B, 1, H)

    B_TILE = b_tile
    B_pad = _round_up(B, B_TILE)
    T_TILE = min(t_tile, _round_up(Tp, 8))
    T_pad = _round_up(Tp, T_TILE)

    q_p = jnp.pad(q, ((0, B_pad - B), (0, 0), (0, 0)))
    prev_p = jnp.pad(previous_hidden,
                     ((0, B_pad - B), (0, T_pad - Tp), (0, 0)))
    length = jnp.array([Tp], dtype=jnp.int32)

    grid = (B_pad // B_TILE, T_pad // T_TILE)

    ctx_p = pl.pallas_call(
        _intra_attn_kernel,
        out_shape=jax.ShapeDtypeStruct((B_pad, 1, H), dtype),
        grid_spec=pltpu.PrefetchScalarGridSpec(
            num_scalar_prefetch=1,
            grid=grid,
            in_specs=[
                pl.BlockSpec((B_TILE, 1, H), lambda b, t, ln: (b, 0, 0)),
                pl.BlockSpec((B_TILE, T_TILE, H), lambda b, t, ln: (b, t, 0)),
            ],
            out_specs=pl.BlockSpec((B_TILE, 1, H), lambda b, t, ln: (b, 0, 0)),
            scratch_shapes=[
                pltpu.VMEM((B_TILE, 1, 1), jnp.float32),   # running max m
                pltpu.VMEM((B_TILE, 1, 1), jnp.float32),   # running denom l
                pltpu.VMEM((B_TILE, 1, H), jnp.float32),   # running context acc
            ]),
        compiler_params=pltpu.CompilerParams(
            dimension_semantics=("parallel", "arbitrary"),
            vmem_limit_bytes=64 * 1024 * 1024),
    )(length, q_p, prev_p)

    context = jnp.transpose(ctx_p[:B], (1, 0, 2))                     # (1, B, H)

    # Module contract: return the grown history (pure layout work -> XLA).
    # TODO(synk): production decode should use a preallocated in-place cache
    # (see header comment) instead of re-materializing the history each step.
    new_previous = jnp.concatenate([previous_hidden, d_bf], axis=1)
    return context, new_previous


def _reference(decoder_hidden, previous_hidden, w):
    """Pure-JAX transliteration of the PyTorch module for verification."""
    if previous_hidden is None:
        return (jnp.zeros_like(decoder_hidden),
                jnp.transpose(decoder_hidden, (1, 0, 2)))
    d = jnp.transpose(decoder_hidden, (1, 0, 2))                      # (B, 1, H)
    proj = jnp.einsum('btk,hk->bht', previous_hidden, w)              # attention_first
    scores = jnp.einsum('bqh,bht->bqt', d, proj)                      # MatrixProduct
    alpha = jax.nn.softmax(scores, axis=-1)                           # Softmax(-1)
    ctx = jnp.einsum('bqt,bth->bqh', alpha, previous_hidden)          # MatrixProduct
    context = jnp.transpose(ctx, (1, 0, 2))                           # Transpose(0,1)
    new_prev = jnp.concatenate([previous_hidden, d], axis=1)
    return context, new_prev


if __name__ == "__main__":
    B, H, Tp = 2, 32, 8   # batch=2, hidden_size=32, 8 previous decode steps
    key = jax.random.PRNGKey(0)
    kd, kp, kw = jax.random.split(key, 3)
    decoder_hidden = jax.random.normal(kd, (1, B, H), dtype=jnp.float32)
    previous_hidden = jax.random.normal(kp, (B, Tp, H), dtype=jnp.float32)
    w = 0.1 * jax.random.normal(kw, (H, H), dtype=jnp.float32)

    # first decode step: previous_hidden is None (trivial branch, no kernel)
    ctx0, prev0 = intra_decoder_attention(decoder_hidden, None, w)
    assert ctx0.shape == (1, B, H) and prev0.shape == (B, 1, H)
    assert bool(jnp.all(ctx0 == 0.0))

    # later decode step: attention over the accumulated history via the kernel
    fwd = jax.jit(intra_decoder_attention)
    context, new_prev = fwd(decoder_hidden, previous_hidden, w)
    jax.block_until_ready((context, new_prev))

    ref_ctx, ref_prev = _reference(decoder_hidden, previous_hidden, w)
    assert context.shape == (1, B, H)
    assert new_prev.shape == (B, Tp + 1, H)
    # approx EUP reciprocal in the softmax normalization -> ~1e-4 rel. error
    assert bool(jnp.allclose(context, ref_ctx, atol=5e-3, rtol=5e-3))
    assert bool(jnp.allclose(new_prev, ref_prev))
    print("KERNEL_OK")
</pallas_src>

<mosaic_0001>
module attributes {stable_mosaic.version = 11 : i64} {
  func.func @_intra_attn_kernel(%arg0: i32, %arg1: i32, %arg2: memref<1xi32, #tpu.memory_space<smem>>, %arg3: memref<8x1x32xf32, #tpu.memory_space<vmem>>, %arg4: memref<8x8x32xf32, #tpu.memory_space<vmem>>, %arg5: memref<8x1x32xf32, #tpu.memory_space<vmem>>, %arg6: memref<8x1x1xf32, #tpu.memory_space<vmem>>, %arg7: memref<8x1x1xf32, #tpu.memory_space<vmem>>, %arg8: memref<8x1x32xf32, #tpu.memory_space<vmem>>) attributes {dimension_semantics = [#tpu.dimension_semantics<parallel>, #tpu.dimension_semantics<arbitrary>], iteration_bounds = array<i64: 1, 1>, scalar_prefetch = 1 : i64, scratch_operands = 3 : i64, tpu.core_type = #tpu.core_type<tc>, window_params = [{transform_indices = @transform_0, window_bounds = array<i64: 8, 1, 32>}, {transform_indices = @transform_1, window_bounds = array<i64: 8, 8, 32>}, {transform_indices = @transform_2, window_bounds = array<i64: 8, 1, 32>}]} {
    %c0_i32 = arith.constant 0 : i32
    %0 = arith.cmpi eq, %arg1, %c0_i32 : i32
    %1 = arith.extui %0 : i1 to i32
    %c0_i32_0 = arith.constant 0 : i32
    %2 = arith.cmpi ne, %1, %c0_i32_0 : i32
    scf.if %2 {
      %cst_34 = arith.constant -1.000000e+30 : f32
      %41 = vector.broadcast %cst_34 : f32 to vector<8x1x1xf32>
      %c0_35 = arith.constant 0 : index
      %c0_36 = arith.constant 0 : index
      %c0_37 = arith.constant 0 : index
      %42 = vector.load %arg6[%c0_35, %c0_36, %c0_37] : memref<8x1x1xf32, #tpu.memory_space<vmem>>, vector<8x1x1xf32>
      tpu.vector_store %arg6[%c0_35, %c0_36, %c0_37], %41 {strides = array<i32>} : memref<8x1x1xf32, #tpu.memory_space<vmem>>, vector<8x1x1xf32>,
      %cst_38 = arith.constant 0.000000e+00 : f32
      %43 = vector.broadcast %cst_38 : f32 to vector<8x1x1xf32>
      %c0_39 = arith.constant 0 : index
      %c0_40 = arith.constant 0 : index
      %c0_41 = arith.constant 0 : index
      %44 = vector.load %arg7[%c0_39, %c0_40, %c0_41] : memref<8x1x1xf32, #tpu.memory_space<vmem>>, vector<8x1x1xf32>
      tpu.vector_store %arg7[%c0_39, %c0_40, %c0_41], %43 {strides = array<i32>} : memref<8x1x1xf32, #tpu.memory_space<vmem>>, vector<8x1x1xf32>,
      %cst_42 = arith.constant 0.000000e+00 : f32
      %45 = vector.broadcast %cst_42 : f32 to vector<8x1x32xf32>
      %c0_43 = arith.constant 0 : index
      %c0_44 = arith.constant 0 : index
      %c0_45 = arith.constant 0 : index
      %46 = vector.load %arg8[%c0_43, %c0_44, %c0_45] : memref<8x1x32xf32, #tpu.memory_space<vmem>>, vector<8x1x32xf32>
      tpu.vector_store %arg8[%c0_43, %c0_44, %c0_45], %45 {strides = array<i32>} : memref<8x1x32xf32, #tpu.memory_space<vmem>>, vector<8x1x32xf32>,
    } else {
    }
    %c0 = arith.constant 0 : index
    %c0_1 = arith.constant 0 : index
    %c0_2 = arith.constant 0 : index
    %3 = vector.load %arg3[%c0, %c0_1, %c0_2] : memref<8x1x32xf32, #tpu.memory_space<vmem>>, vector<8x1x32xf32>
    %c0_3 = arith.constant 0 : index
    %c0_4 = arith.constant 0 : index
    %c0_5 = arith.constant 0 : index
    %4 = vector.load %arg4[%c0_3, %c0_4, %c0_5] : memref<8x8x32xf32, #tpu.memory_space<vmem>>, vector<8x8x32xf32>
    "tpu.trace_start"() <{level = 10 : i32, message = "bqh,bth->bqt"}> : () -> ()
    %cst = arith.constant dense<0.000000e+00> : vector<8x1x8xf32>
    %5 = tpu.matmul %3, %4, %cst {dimension_numbers = #tpu.dot_dimension_numbers<[2], [2], [1], [1], [0, 0, 0, 1, 1, 1], [0], [0]>} : vector<8x1x32xf32>, vector<8x8x32xf32>, vector<8x1x8xf32> -> vector<8x1x8xf32>
    "tpu.trace_stop"() : () -> ()
    %c8_i32 = arith.constant 8 : i32
    %6 = arith.muli %arg1, %c8_i32 : i32
    %7 = tpu.iota {dimensions = array<i32: 2>} : vector<8x1x8xi32>
    %8 = vector.broadcast %6 : i32 to vector<8x1x8xi32>
    %9 = arith.addi %8, %7 : vector<8x1x8xi32>
    %c0_6 = arith.constant 0 : index
    %10 = memref.load %arg2[%c0_6] : memref<1xi32, #tpu.memory_space<smem>>
    %11 = vector.broadcast %10 : i32 to vector<8x1x8xi32>
    %12 = arith.cmpi slt, %9, %11 : vector<8x1x8xi32>
    %cst_7 = arith.constant -1.000000e+30 : f32
    %13 = vector.broadcast %cst_7 : f32 to vector<8x1x8xf32>
    %14 = arith.select %12, %5, %13 : vector<8x1x8xi1>, vector<8x1x8xf32>
    %c0_8 = arith.constant 0 : index
    %c0_9 = arith.constant 0 : index
    %c0_10 = arith.constant 0 : index
    %15 = vector.load %arg6[%c0_8, %c0_9, %c0_10] : memref<8x1x1xf32, #tpu.memory_space<vmem>>, vector<8x1x1xf32>
    %cst_11 = arith.constant dense<0xFF800000> : vector<8x1xf32>
    %16 = vector.multi_reduction <maximumf>, %14, %cst_11 [2] : vector<8x1x8xf32> to vector<8x1xf32>
    %17 = vector.shape_cast %16 : vector<8x1xf32> to vector<8x1x1xf32>
    %18 = arith.maximumf %15, %17 : vector<8x1x1xf32>
    %c0_12 = arith.constant 0 : index
    %c0_13 = arith.constant 0 : index
    %c0_14 = arith.constant 0 : index
    %19 = vector.load %arg6[%c0_12, %c0_13, %c0_14] : memref<8x1x1xf32, #tpu.memory_space<vmem>>, vector<8x1x1xf32>
    %20 = arith.subf %19, %18 : vector<8x1x1xf32>
    %21 = math.exp %20 : vector<8x1x1xf32>
    %22 = vector.broadcast %18 : vector<8x1x1xf32> to vector<8x1x8xf32>
    %23 = arith.subf %14, %22 : vector<8x1x8xf32>
    %24 = math.exp %23 : vector<8x1x8xf32>
    %c0_15 = arith.constant 0 : index
    %c0_16 = arith.constant 0 : index
    %c0_17 = arith.constant 0 : index
    %25 = vector.load %arg7[%c0_15, %c0_16, %c0_17] : memref<8x1x1xf32, #tpu.memory_space<vmem>>, vector<8x1x1xf32>
    %26 = arith.mulf %21, %25 : vector<8x1x1xf32>
    %cst_18 = arith.constant dense<0.000000e+00> : vector<8x1xf32>
    %27 = vector.multi_reduction <add>, %24, %cst_18 [2] : vector<8x1x8xf32> to vector<8x1xf32>
    %28 = vector.shape_cast %27 : vector<8x1xf32> to vector<8x1x1xf32>
    %29 = arith.addf %26, %28 : vector<8x1x1xf32>
    %c0_19 = arith.constant 0 : index
    %c0_20 = arith.constant 0 : index
    %c0_21 = arith.constant 0 : index
    %30 = vector.load %arg7[%c0_19, %c0_20, %c0_21] : memref<8x1x1xf32, #tpu.memory_space<vmem>>, vector<8x1x1xf32>
    tpu.vector_store %arg7[%c0_19, %c0_20, %c0_21], %29 {strides = array<i32>} : memref<8x1x1xf32, #tpu.memory_space<vmem>>, vector<8x1x1xf32>,
    %c0_22 = arith.constant 0 : index
    %c0_23 = arith.constant 0 : index
    %c0_24 = arith.constant 0 : index
    %31 = vector.load %arg8[%c0_22, %c0_23, %c0_24] : memref<8x1x32xf32, #tpu.memory_space<vmem>>, vector<8x1x32xf32>
    %32 = vector.broadcast %21 : vector<8x1x1xf32> to vector<8x1x32xf32>
    %33 = arith.mulf %32, %31 : vector<8x1x32xf32>
    "tpu.trace_start"() <{level = 10 : i32, message = "bqt,bth->bqh"}> : () -> ()
    %cst_25 = arith.constant dense<0.000000e+00> : vector<8x1x32xf32>
    %34 = tpu.matmul %24, %4, %cst_25 {dimension_numbers = #tpu.dot_dimension_numbers<[2], [1], [1], [2], [0, 0, 0, 1, 1, 2], [0], [0]>} : vector<8x1x8xf32>, vector<8x8x32xf32>, vector<8x1x32xf32> -> vector<8x1x32xf32>
    "tpu.trace_stop"() : () -> ()
    %35 = arith.addf %33, %34 : vector<8x1x32xf32>
    %c0_26 = arith.constant 0 : index
    %c0_27 = arith.constant 0 : index
    %c0_28 = arith.constant 0 : index
    %36 = vector.load %arg8[%c0_26, %c0_27, %c0_28] : memref<8x1x32xf32, #tpu.memory_space<vmem>>, vector<8x1x32xf32>
    tpu.vector_store %arg8[%c0_26, %c0_27, %c0_28], %35 {strides = array<i32>} : memref<8x1x32xf32, #tpu.memory_space<vmem>>, vector<8x1x32xf32>,
    %c0_29 = arith.constant 0 : index
    %c0_30 = arith.constant 0 : index
    %c0_31 = arith.constant 0 : index
    %37 = vector.load %arg6[%c0_29, %c0_30, %c0_31] : memref<8x1x1xf32, #tpu.memory_space<vmem>>, vector<8x1x1xf32>
    tpu.vector_store %arg6[%c0_29, %c0_30, %c0_31], %18 {strides = array<i32>} : memref<8x1x1xf32, #tpu.memory_space<vmem>>, vector<8x1x1xf32>,
    %c0_i32_32 = arith.constant 0 : i32
    %38 = arith.cmpi eq, %arg1, %c0_i32_32 : i32
    %39 = arith.extui %38 : i1 to i32
    %c0_i32_33 = arith.constant 0 : i32
    %40 = arith.cmpi ne, %39, %c0_i32_33 : i32
    scf.if %40 {
      %c0_34 = arith.constant 0 : index
      %c0_35 = arith.constant 0 : index
      %c0_36 = arith.constant 0 : index
      %41 = vector.load %arg7[%c0_34, %c0_35, %c0_36] : memref<8x1x1xf32, #tpu.memory_space<vmem>>, vector<8x1x1xf32>
      %42 = tpu.reciprocal %41 {approx = true} : vector<8x1x1xf32> -> vector<8x1x1xf32>
      %c0_37 = arith.constant 0 : index
      %c0_38 = arith.constant 0 : index
      %c0_39 = arith.constant 0 : index
      %43 = vector.load %arg8[%c0_37, %c0_38, %c0_39] : memref<8x1x32xf32, #tpu.memory_space<vmem>>, vector<8x1x32xf32>
      %44 = vector.broadcast %42 : vector<8x1x1xf32> to vector<8x1x32xf32>
      %45 = arith.mulf %43, %44 : vector<8x1x32xf32>
      %c0_40 = arith.constant 0 : index
      %c0_41 = arith.constant 0 : index
      %c0_42 = arith.constant 0 : index
      %46 = vector.load %arg5[%c0_40, %c0_41, %c0_42] : memref<8x1x32xf32, #tpu.memory_space<vmem>>, vector<8x1x32xf32>
      tpu.vector_store %arg5[%c0_40, %c0_41, %c0_42], %45 {strides = array<i32>} : memref<8x1x32xf32, #tpu.memory_space<vmem>>, vector<8x1x32xf32>,
    } else {
    }
    return
  }
  func.func @transform_0(%arg0: i32, %arg1: i32, %arg2: memref<1xi32, #tpu.memory_space<smem>>) -> (i32, i32, i32) {
    %c0_i32 = arith.constant 0 : i32
    %c0_i32_0 = arith.constant 0 : i32
    %c0_i32_1 = arith.constant 0 : i32
    return %arg0, %c0_i32, %c0_i32_0 : i32, i32, i32
  }
  func.func @transform_1(%arg0: i32, %arg1: i32, %arg2: memref<1xi32, #tpu.memory_space<smem>>) -> (i32, i32, i32) {
    %c0_i32 = arith.constant 0 : i32
    %c0_i32_0 = arith.constant 0 : i32
    return %arg0, %arg1, %c0_i32 : i32, i32, i32
  }
  func.func @transform_2(%arg0: i32, %arg1: i32, %arg2: memref<1xi32, #tpu.memory_space<smem>>) -> (i32, i32, i32) {
    %c0_i32 = arith.constant 0 : i32
    %c0_i32_0 = arith.constant 0 : i32
    %c0_i32_1 = arith.constant 0 : i32
    return %arg0, %c0_i32, %c0_i32_0 : i32, i32, i32
  }
}

</mosaic_0001>

<bundles_post_ra>
// kernel: intra_decoder_attention.1
= control target key start
LH: loop header
LB: loop body
LE: loop exit
PB: predicated region body
PF: predicated region fallthrough
CT: control target
= control target key end

     0   :  { %vm59_vm0 = vcmask 261120   ;;  %v269_v16 = vlaneseq  ;;  %vm17_vm1 = vcmask 0   ;;  %v925_v18 = vmov -1e+30   ;;  %s1237_s2 = inlined_call_operand.vmem [shape: f32[8,8,32], index: 2, kind: input, shape index: {}]   ;;  %s1238_s1 = inlined_call_operand.vmem [shape: f32[8,1,32], index: 1, kind: input, shape index: {}]   ;;  %s1239_s0 = inlined_call_operand.<no memory space> [shape: s32[1], index: 0, kind: input, shape index: {}]   ;;  %s1240_s3 = inlined_call_operand.vmem [shape: f32[8,1,32], index: 3, kind: output, shape index: {}]  }
   0x1   :  { %v51_v0 = vld [vmem:[%s1237_s2] sm:$0xff]  ;;  %v53_v1 = vld [vmem:[%s1237_s2 + $0x10] sm:$0xff]  ;;  %v54_v5 = vld [vmem:[%s1237_s2 + $0x18] sm:$0xff]  ;;  %18 = vst.msk [vmem:[#allocation2] sm:$0x1] %vm17_vm1, %v925_v18  ;;  %v274_v19 = vstv %s1239_s0  ;;  %vm292_vm3 = vcmask 57344  }
   0x2   :  { %v43_v2 = vld [vmem:[%s1238_s1] sm:$0x1]  ;;  %847 = vmatpush.xpose.msk.msra.mxu0 %vm59_vm0, %v51_v0  ;;  %851 = vmatpush.xpose.msk.msra.mxu2 %vm59_vm0, %v53_v1  ;;  %v45_v3 = vld [vmem:[%s1238_s1 + $0x2] sm:$0x1]  ;;  %v57_v4 = vld [vmem:[%s1237_s2 + $0x30] sm:$0xff]  ;;  %v270_v17 = vand.u32 127, %v269_v16 }
   0x3   :  { %853 = vmatpush.xpose.msk.msra.mxu3 %vm59_vm0, %v54_v5  ;;  %v46_v6 = vld [vmem:[%s1238_s1 + $0x3] sm:$0x1]  ;;  %v58_v7 = vld [vmem:[%s1237_s2 + $0x38] sm:$0xff]  ;;  %v52_v8 = vld [vmem:[%s1237_s2 + $0x8] sm:$0xff]  ;;  %19 = vst.msk [vmem:[#allocation2 + $0x1] sm:$0x1] %vm17_vm1, %v925_v18 }
   0x4   :  { %v56_v9 = vld [vmem:[%s1237_s2 + $0x28] sm:$0xff]  ;;  %v55_v10 = vld [vmem:[%s1237_s2 + $0x20] sm:$0xff]  ;;  %849 = vmatpush.xpose.msk.msra.mxu1 %vm59_vm0, %v52_v8  ;;  %20 = vst.msk [vmem:[#allocation2 + $0x2] sm:$0x1] %vm17_vm1, %v925_v18  ;;  %vm1019_vm2 = vcmp.lt.s32.totalorder %v270_v17, %v274_v19  ;;  %v926_v45 = vmov 0   ;;  %v927_v46 = vmov 0.0  }
   0x5   :  { %848 = vmatmul.msk.f32.vlgmr.msra.gmra.mxu0 %vm59_vm0, %v43_v2  ;;  %852 = vmatmul.msk.f32.vlgmr.msra.gmra.mxu2 %vm59_vm0, %v45_v3  ;;  %v44_v11 = vld [vmem:[%s1238_s1 + $0x1] sm:$0x1]  ;;  %v49_v12 = vld [vmem:[%s1238_s1 + $0x6] sm:$0x1]  ;;  %v47_v13 = vld [vmem:[%s1238_s1 + $0x4] sm:$0x1] }
   0x6   :  { %859 = vmatpush.xpose.msk.msrb.mxu2 %vm59_vm0, %v57_v4  ;;  %854 = vmatmul.msk.f32.vlgmr.msra.gmra.mxu3 %vm59_vm0, %v46_v6  ;;  %v50_v14 = vld [vmem:[%s1238_s1 + $0x7] sm:$0x1]  ;;  %v48_v15 = vld [vmem:[%s1238_s1 + $0x5] sm:$0x1]  ;;  %21 = vst.msk [vmem:[#allocation2 + $0x3] sm:$0x1] %vm17_vm1, %v925_v18 }
   0x7   :  { %861 = vmatpush.xpose.msk.msrb.mxu3 %vm59_vm0, %v58_v7  ;;  %855 = vmatpush.xpose.msk.msrb.mxu0 %vm59_vm0, %v55_v10  ;;  %22 = vst.msk [vmem:[#allocation2 + $0x4] sm:$0x1] %vm17_vm1, %v925_v18  ;;  %vm34_vm4 = vcmask 253952   ;;  %vm542_vm5 = vcmask 64512  }
   0x8   :  { %857 = vmatpush.xpose.msk.msrb.mxu1 %vm59_vm0, %v56_v9  ;;  %23 = vst.msk [vmem:[#allocation2 + $0x5] sm:$0x1] %vm17_vm1, %v925_v18  ;;  %876 = vset.pattern.permute.xlu1 %v926_v45  ;;  %v284_v47 = vld [vmem:[#allocation2] sm:$0x1] }
   0x9   :  { %850 = vmatmul.msk.f32.vlgmr.msra.gmra.mxu1 %vm59_vm0, %v44_v11  ;;  %24 = vst.msk [vmem:[#allocation2 + $0x6] sm:$0x1] %vm17_vm1, %v925_v18  ;;  %874 = vset.pattern.permute.xlu2 %v926_v45 }
   0xa   :  { %607 = vmatpush.msra.mxu2 %v53_v1  ;;  %25 = vst.msk [vmem:[#allocation2 + $0x7] sm:$0x1] %vm17_vm1, %v925_v18  ;;  %875 = vset.pattern.permute.xlu0 %v926_v45  ;;  %v285_v52 = vld [vmem:[#allocation2 + $0x1] sm:$0x1] }
   0xb   :  { %561 = vmatpush.msra.mxu0 %v51_v0  ;;  %630 = vmatpush.msra.mxu3 %v54_v5  ;;  %28 = vst.msk [vmem:[#allocation3 + $0x2] sm:$0x1] %vm17_vm1, %v927_v46  ;;  %v286_v50 = vld [vmem:[#allocation2 + $0x2] sm:$0x1] }
   0xc   :  { %584 = vmatpush.msra.mxu1 %v52_v8  ;;  %26 = vst.msk [vmem:[#allocation3] sm:$0x1] %vm17_vm1, %v927_v46 }
   0xd   :  { %860 = vmatmul.msk.f32.vlgmr.msrb.gmra.mxu2 %vm59_vm0, %v49_v12  ;;  %856 = vmatmul.msk.f32.vlgmr.msrb.gmra.mxu0 %vm59_vm0, %v47_v13  ;;  %27 = vst.msk [vmem:[#allocation3 + $0x1] sm:$0x1] %vm17_vm1, %v927_v46  ;;  %v287_v58 = vld [vmem:[#allocation2 + $0x3] sm:$0x1] }
   0xe   :  { %862 = vmatmul.msk.f32.vlgmr.msrb.gmra.mxu3 %vm59_vm0, %v50_v14  ;;  %699 = vmatpush.msrb.mxu2 %v57_v4  ;;  %29 = vst.msk [vmem:[#allocation3 + $0x3] sm:$0x1] %vm17_vm1, %v927_v46  ;;  %v288_v4 = vld [vmem:[#allocation2 + $0x4] sm:$0x1] }
   0xf   :  { %653 = vmatpush.msrb.mxu0 %v55_v10  ;;  %722 = vmatpush.msrb.mxu3 %v58_v7  ;;  %30 = vst.msk [vmem:[#allocation3 + $0x4] sm:$0x1] %vm17_vm1, %v927_v46  ;;  %v289_v62 = vld [vmem:[#allocation2 + $0x5] sm:$0x1] }
  0x10   :  { %31 = vst.msk [vmem:[#allocation3 + $0x5] sm:$0x1] %vm17_vm1, %v927_v46  ;;  %v290_v57 = vld [vmem:[#allocation2 + $0x6] sm:$0x1] }
  0x11   :  { %858 = vmatmul.msk.f32.vlgmr.msrb.gmra.mxu1 %vm59_vm0, %v48_v15  ;;  %32 = vst.msk [vmem:[#allocation3 + $0x6] sm:$0x1] %vm17_vm1, %v927_v46  ;;  %v1097_v3 = vld [vmem:[#allocation2 + $0x7] sm:$0x1] }
  0x12   :  { %676 = vmatpush.msrb.mxu1 %v56_v9  ;;  %33 = vst.msk [vmem:[#allocation3 + $0x7] sm:$0x1] %vm17_vm1, %v927_v46 }
  0x13   :  { %37 = vst.msk [vmem:[#allocation4 + $0x2] sm:$0x1] %vm34_vm4, %v927_v46 }
  0x14   :  { %35 = vst.msk [vmem:[#allocation4] sm:$0x1] %vm34_vm4, %v927_v46 }
  0x15   :  { %36 = vst.msk [vmem:[#allocation4 + $0x1] sm:$0x1] %vm34_vm4, %v927_v46 }
  0x16   :  { %38 = vst.msk [vmem:[#allocation4 + $0x3] sm:$0x1] %vm34_vm4, %v927_v46 }
  0x17   :  { %39 = vst.msk [vmem:[#allocation4 + $0x4] sm:$0x1] %vm34_vm4, %v927_v46 }
  0x18   :  { %40 = vst.msk [vmem:[#allocation4 + $0x5] sm:$0x1] %vm34_vm4, %v927_v46 }
  0x19   :  { %41 = vst.msk [vmem:[#allocation4 + $0x6] sm:$0x1] %vm34_vm4, %v927_v46 }
  0x1a   :  { %42 = vst.msk [vmem:[#allocation4 + $0x7] sm:$0x1] %vm34_vm4, %v927_v46 }
  0x82   :  { %v83_v21 = vpop.f32.mrf.mxu0 }
  0x83   :  { %v1028_v22 = vsel %vm1019_vm2, %v83_v21, -1e+30 }
  0x84   :  { %v293_v23 = vsel %vm292_vm3, %v1028_v22, -inf }
  0x85   :  { %294 = vmax.xlane.f32.xlu1 %v293_v23 }
  0x86   :  { %v109_v24 = vpop.f32.mrf.mxu1 }
  0x87   :  { %v1035_v25 = vsel %vm1019_vm2, %v109_v24, -1e+30 }
  0x88   :  { %v135_v26 = vpop.f32.mrf.mxu2  ;;  %v296_v30 = vsel %vm292_vm3, %v1035_v25, -inf }
  0x89   :  { %v1039_v27 = vsel %vm1019_vm2, %v135_v26, -1e+30  ;;  %v161_v28 = vpop.f32.mrf.mxu3 }
  0x8a   :  { %v299_v29 = vsel %vm292_vm3, %v1039_v27, -inf  ;;  %v1047_v31 = vsel %vm1019_vm2, %v161_v28, -1e+30  ;;  %v187_v39 = vpop.f32.mrf.mxu0 }
  0x8b   :  { %300 = vmax.xlane.f32.xlu0 %v299_v29  ;;  %v302_v35 = vsel %vm292_vm3, %v1047_v31, -inf  ;;  %v1069_v42 = vsel %vm1019_vm2, %v187_v39, -1e+30 }
  0x8c   :  { %v305_v44 = vsel %vm292_vm3, %v1069_v42, -inf }
  0x8d   :  { %297 = vmax.xlane.f32.xlu1 %v296_v30 }
  0x8e   :  { %v213_v32 = vpop.f32.mrf.mxu1 }
  0x8f   :  { %v1051_v33 = vsel %vm1019_vm2, %v213_v32, -1e+30 }
  0x90   :  { %v239_v34 = vpop.f32.mrf.mxu2  ;;  %v308_v40 = vsel %vm292_vm3, %v1051_v33, -inf }
  0x91   :  { %v1057_v36 = vsel %vm1019_vm2, %v239_v34, -1e+30  ;;  %v265_v38 = vpop.f32.mrf.mxu3 }
  0x92   :  { %v311_v37 = vsel %vm292_vm3, %v1057_v36, -inf  ;;  %v1065_v41 = vsel %vm1019_vm2, %v265_v38, -1e+30 }
  0x93   :  { %312 = vmax.xlane.f32.xlu2 %v311_v37  ;;  %303 = vmax.xlane.f32.xlu0 %v302_v35  ;;  %v314_v43 = vsel %vm292_vm3, %v1065_v41, -inf }
  0x95   :  { %309 = vmax.xlane.f32.xlu1 %v308_v40 }
  0x9b   :  { %315 = vmax.xlane.f32.xlu2 %v314_v43  ;;  %306 = vmax.xlane.f32.xlu0 %v305_v44 }
  0xf8   :  { %v295_v48 = vpop.xlane.xlu1 %294 }
  0xf9   :  { %v317_v49 = vmax.f32 %v284_v47, %v295_v48 }
  0xfb   :  { %744 = vst.msk [vmem:[#allocation2] sm:$0x1] %vm17_vm1, %v317_v49  ;;  %351 = vperm.xlu1 %876, %v317_v49   ;;  %v325_v12 = vsub.f32 %v284_v47, %v317_v49 }
  0xfd   :  { %v333_v15 = vmul.f32 1.442695, %v325_v12 }
  0xfe   :  { %v301_v51 = vpop.xlane.xlu0 %300 }
  0xff   :  { %v319_v53 = vmax.f32 %v286_v50, %v301_v51 }
 0x100   :  { %v298_v54 = vpop.xlane.xlu1 %297 }
 0x101   :  { %746 = vst.msk [vmem:[#allocation2 + $0x2] sm:$0x1] %vm17_vm1, %v319_v53  ;;  %363 = vperm.xlu2 %874, %v319_v53   ;;  %v318_v55 = vmax.f32 %v285_v52, %v298_v54  ;;  %v327_v56 = vsub.f32 %v286_v50, %v319_v53 }
 0x103   :  { %745 = vst.msk [vmem:[#allocation2 + $0x1] sm:$0x1] %vm17_vm1, %v318_v55  ;;  %v337_v59 = vmul.f32 1.442695, %v327_v56  ;;  %v326_v13 = vsub.f32 %v285_v52, %v318_v55 }
 0x105   :  { %877 = vpow2.f32 %v337_v59  ;;  %v335_v16 = vmul.f32 1.442695, %v326_v13 }
 0x106   :  { %v313_v60 = vpop.xlane.xlu2 %312  ;;  %v304_v61 = vpop.xlane.xlu0 %303 }
 0x107   :  { %v323_v63 = vmax.f32 %v290_v57, %v313_v60  ;;  %v320_v0 = vmax.f32 %v287_v58, %v304_v61 }
 0x108   :  { %v310_v1 = vpop.xlane.xlu1 %309 }
 0x109   :  { %750 = vst.msk [vmem:[#allocation2 + $0x6] sm:$0x1] %vm17_vm1, %v323_v63  ;;  %369 = vperm.xlu0 %875, %v320_v0   ;;  %357 = vperm.xlu2 %874, %v318_v55   ;;  %v322_v2 = vmax.f32 %v289_v62, %v310_v1  ;;  %v328_v17 = vsub.f32 %v287_v58, %v320_v0 }
 0x10a   :  { %747 = vst.msk [vmem:[#allocation2 + $0x3] sm:$0x1] %vm17_vm1, %v320_v0  ;;  %v331_v26 = vsub.f32 %v290_v57, %v323_v63 }
 0x10b   :  { %749 = vst.msk [vmem:[#allocation2 + $0x5] sm:$0x1] %vm17_vm1, %v322_v2  ;;  %v1102_v9 = vpop.eup %877  ;;  %v330_v18 = vsub.f32 %v289_v62, %v322_v2  ;;  %v339_v20 = vmul.f32 1.442695, %v328_v17 }
 0x10c   :  { %v345_v28 = vmul.f32 1.442695, %v331_v26 }
 0x10d   :  { %v343_v21 = vmul.f32 1.442695, %v330_v18 }
 0x10e   :  { %v316_v5 = vpop.xlane.xlu2 %315  ;;  %v307_v6 = vpop.xlane.xlu0 %306 }
 0x10f   :  { %v1100_v7 = vmax.f32 %v1097_v3, %v316_v5  ;;  %v321_v8 = vmax.f32 %v288_v4, %v307_v6 }
 0x111   :  { %v332_v10 = vsub.f32 %v1097_v3, %v1100_v7  ;;  %751 = vst.msk [vmem:[#allocation2 + $0x7] sm:$0x1] %vm17_vm1, %v1100_v7  ;;  %500 = vperm.xlu0 %875, %v1102_v9   ;;  %393 = vperm.xlu1 %876, %v1100_v7   ;;  %v329_v11 = vsub.f32 %v288_v4, %v321_v8  ;;  %v422_v3 = vld [vmem:[#allocation3 + $0x1] sm:$0x1] }
 0x112   :  { %387 = vperm.xlu2 %874, %v323_v63   ;;  %748 = vst.msk [vmem:[#allocation2 + $0x4] sm:$0x1] %vm17_vm1, %v321_v8 }
 0x113   :  { %v341_v14 = vmul.f32 1.442695, %v329_v11 }
 0x115   :  { %879 = vpow2.f32 %v341_v14 }
 0x116   :  { %881 = vpow2.f32 %v333_v15 }
 0x117   :  { %883 = vpow2.f32 %v335_v16 }
 0x118   :  { %885 = vpow2.f32 %v339_v20 }
 0x119   :  { %381 = vperm.xlu1 %876, %v322_v2   ;;  %887 = vpow2.f32 %v343_v21 }
 0x11a   :  { %375 = vperm.xlu2 %874, %v321_v8   ;;  %889 = vpow2.f32 %v345_v28 }
 0x11b   :  { %v1111_v19 = vpop.eup %879 }
 0x11c   :  { %512 = vperm.xlu0 %875, %v1111_v19   ;;  %v1114_v23 = vpop.eup %881 }
 0x11d   :  { %v1116_v24 = vpop.eup %883 }
 0x11e   :  { %v1120_v29 = vpop.eup %885  ;;  %v430_v7 = vmul.f32 %v1116_v24, %v422_v3  ;;  %v481_v3 = vld [vmem:[#allocation4 + $0x3] sm:$0x1] }
 0x11f   :  { %v1122_v30 = vpop.eup %887 }
 0x120   :  { %v1126_v32 = vpop.eup %889 }
 0x121   :  { %488 = vperm.xlu1 %876, %v1114_v23  }
 0x122   :  { %494 = vperm.xlu2 %874, %v1116_v24  }
 0x129   :  { %506 = vperm.xlu1 %876, %v1120_v29  }
 0x12a   :  { %518 = vperm.xlu2 %874, %v1122_v30  }
 0x131   :  { %524 = vperm.xlu1 %876, %v1126_v32  }
 0x15b   :  { %v364_v34 = vpop.permute.xlu2 %363 }
 0x15c   :  { %v366_v35 = vperm.slane %v364_v34, 0  ;;  %v423_v34 = vld [vmem:[#allocation3 + $0x2] sm:$0x1] }
 0x15e   :  { %v399_v37 = vsub.f32 %v1039_v27, %v366_v35  ;;  %v431_v35 = vmul.f32 %v1102_v9, %v423_v34 }
 0x160   :  { %v409_v38 = vmul.f32 1.442695, %v399_v37 }
 0x162   :  { %891 = vpow2.f32 %v409_v38 }
 0x163   :  { %v358_v39 = vpop.permute.xlu2 %357 }
 0x164   :  { %v360_v40 = vperm.slane %v358_v39, 0 }
 0x166   :  { %v398_v43 = vsub.f32 %v1035_v25, %v360_v40 }
 0x168   :  { %v892_v44 = vpop.eup %891  ;;  %v407_v45 = vmul.f32 1.442695, %v398_v43 }
 0x169   :  { %865 = vmatmul.msk.f32.vlgmr.msra.gmra.mxu2 %vm542_vm5, %v892_v44  ;;  %v443_v47 = vsel %vm292_vm3, %v892_v44, 0.0 }
 0x16a   :  { %893 = vpow2.f32 %v407_v45  ;;  %444 = vadd.xlane.f32.xlu1 %v443_v47 }
 0x16c   :  { %v388_v48 = vpop.permute.xlu2 %387 }
 0x16d   :  { %v390_v27 = vperm.slane %v388_v48, 0  ;;  %v352_v49 = vpop.permute.xlu1 %351  ;;  %v480_v48 = vld [vmem:[#allocation4 + $0x2] sm:$0x1] }
 0x16e   :  { %v354_v50 = vperm.slane %v352_v49, 0 }
 0x16f   :  { %v403_v46 = vsub.f32 %v1057_v36, %v390_v27  ;;  %v479_v27 = vld [vmem:[#allocation4 + $0x1] sm:$0x1] }
 0x170   :  { %v894_v51 = vpop.eup %893  ;;  %v397_v52 = vsub.f32 %v1028_v22, %v354_v50  ;;  %v421_v50 = vld [vmem:[#allocation3] sm:$0x1] }
 0x171   :  { %v417_v53 = vmul.f32 1.442695, %v403_v46  ;;  %864 = vmatmul.msk.f32.vlgmr.msra.gmra.mxu1 %vm542_vm5, %v894_v51  ;;  %v440_v25 = vsel %vm292_vm3, %v894_v51, 0.0  ;;  %v429_v24 = vmul.f32 %v1114_v23, %v421_v50 }
 0x172   :  { %v405_v54 = vmul.f32 1.442695, %v397_v52  ;;  %441 = vadd.xlane.f32.xlu2 %v440_v25 }
 0x173   :  { %895 = vpow2.f32 %v417_v53 }
 0x174   :  { %897 = vpow2.f32 %v405_v54  ;;  %v376_v55 = vpop.permute.xlu2 %375 }
 0x175   :  { %v378_v56 = vperm.slane %v376_v55, 0 }
 0x177   :  { %v401_v57 = vsub.f32 %v1069_v42, %v378_v56 }
 0x179   :  { %v896_v58 = vpop.eup %895  ;;  %v413_v59 = vmul.f32 1.442695, %v401_v57 }
 0x17a   :  { %v898_v60 = vpop.eup %897  ;;  %869 = vmatmul.msk.f32.vlgmr.msrb.gmra.mxu2 %vm542_vm5, %v896_v58  ;;  %v455_v15 = vsel %vm292_vm3, %v896_v58, 0.0 }
 0x17b   :  { %899 = vpow2.f32 %v413_v59  ;;  %v370_v22 = vpop.permute.xlu0 %369  ;;  %863 = vmatmul.msk.f32.vlgmr.msra.gmra.mxu0 %vm542_vm5, %v898_v60  ;;  %v437_v36 = vsel %vm292_vm3, %v898_v60, 0.0  ;;  %v425_v59 = vld [vmem:[#allocation3 + $0x4] sm:$0x1]  ;;  %v478_v60 = vld [vmem:[#allocation4] sm:$0x1] }
 0x17c   :  { %v372_v61 = vperm.slane %v370_v22, 0  ;;  %438 = vadd.xlane.f32.xlu0 %v437_v36  ;;  %v495_v26 = vpop.permute.xlu2 %494  ;;  %v433_v36 = vmul.f32 %v1111_v19, %v425_v59  ;;  %v482_v19 = vld [vmem:[#allocation4 + $0x4] sm:$0x1] }
 0x17d   :  { %v497_v9 = vperm.slane %v495_v26, 0 }
 0x17e   :  { %v400_v62 = vsub.f32 %v1047_v31, %v372_v61 }
 0x17f   :  { %v535_v52 = vmul.f32 %v497_v9, %v479_v27 }
 0x180   :  { %v411_v63 = vmul.f32 1.442695, %v400_v62 }
 0x181   :  { %v900_v0 = vpop.eup %899 }
 0x182   :  { %901 = vpow2.f32 %v411_v63  ;;  %v449_v1 = vsel %vm292_vm3, %v900_v0, 0.0 }
 0x183   :  { %867 = vmatmul.msk.f32.vlgmr.msrb.gmra.mxu0 %vm542_vm5, %v900_v0  ;;  %v394_v42 = vpop.permute.xlu1 %393  ;;  %v501_v40 = vpop.permute.xlu0 %500 }
 0x184   :  { %v396_v2 = vperm.slane %v394_v42, 0  ;;  %450 = vadd.xlane.f32.xlu0 %v449_v1  ;;  %v1178_v37 = vpop.permute.xlu2 %518  ;;  %v503_v44 = vperm.slane %v501_v40, 0  ;;  %v484_v1 = vld [vmem:[#allocation4 + $0x6] sm:$0x1] }
 0x185   :  { %v521_v27 = vperm.slane %v1178_v37, 0 }
 0x186   :  { %v404_v4 = vsub.f32 %v1065_v41, %v396_v2  ;;  %v536_v49 = vmul.f32 %v503_v44, %v480_v48  ;;  %v424_v2 = vld [vmem:[#allocation3 + $0x3] sm:$0x1] }
 0x188   :  { %v902_v5 = vpop.eup %901  ;;  %v419_v6 = vmul.f32 1.442695, %v404_v4 }
 0x189   :  { %866 = vmatmul.msk.f32.vlgmr.msra.gmra.mxu3 %vm542_vm5, %v902_v5  ;;  %v446_v8 = vsel %vm292_vm3, %v902_v5, 0.0 }
 0x18a   :  { %903 = vpow2.f32 %v419_v6  ;;  %447 = vadd.xlane.f32.xlu2 %v446_v8  ;;  %v432_v8 = vmul.f32 %v1120_v29, %v424_v2 }
 0x18b   :  { %v382_v31 = vpop.permute.xlu1 %381 }
 0x18c   :  { %v384_v11 = vperm.slane %v382_v31, 0 }
 0x18e   :  { %v402_v12 = vsub.f32 %v1051_v33, %v384_v11  ;;  %v347_v33 = vmul.f32 1.442695, %v332_v10  ;;  %v513_v45 = vpop.permute.xlu0 %512 }
 0x18f   :  { %v515_v5 = vperm.slane %v513_v45, 0 }
 0x190   :  { %v904_v13 = vpop.eup %903  ;;  %v415_v14 = vmul.f32 1.442695, %v402_v12 }
 0x191   :  { %870 = vmatmul.msk.f32.vlgmr.msrb.gmra.mxu3 %vm542_vm5, %v904_v13  ;;  %v458_v41 = vsel %vm292_vm3, %v904_v13, 0.0 }
 0x192   :  { %905 = vpow2.f32 %v415_v14  ;;  %456 = vadd.xlane.f32.xlu2 %v455_v15  ;;  %459 = vadd.xlane.f32.xlu0 %v458_v41  ;;  %v538_v14 = vmul.f32 %v515_v5, %v482_v19 }
 0x193   :  { %907 = vpow2.f32 %v347_v33  ;;  %v489_v20 = vpop.permute.xlu1 %488  ;;  %v428_v33 = vld [vmem:[#allocation3 + $0x7] sm:$0x1] }
 0x194   :  { %v491_v58 = vperm.slane %v489_v20, 0 }
 0x196   :  { %v534_v23 = vmul.f32 %v491_v58, %v478_v60 }
 0x198   :  { %v906_v16 = vpop.eup %905 }
 0x199   :  { %868 = vmatmul.msk.f32.vlgmr.msrb.gmra.mxu1 %vm542_vm5, %v906_v16  ;;  %v452_v17 = vsel %vm292_vm3, %v906_v16, 0.0  ;;  %v1172_v18 = vpop.eup %907  ;;  %v427_v16 = vld [vmem:[#allocation3 + $0x6] sm:$0x1] }
 0x19a   :  { %453 = vadd.xlane.f32.xlu1 %v452_v17  ;;  %v435_v29 = vmul.f32 %v1126_v32, %v427_v16  ;;  %v436_v26 = vmul.f32 %v1172_v18, %v428_v33 }
 0x19b   :  { %v1175_v21 = vpop.permute.xlu1 %506 }
 0x1a3   :  { %v525_v28 = vpop.permute.xlu1 %524 }
 0x1a4   :  { %v527_v62 = vperm.slane %v525_v28, 0 }
 0x1a6   :  { %530 = vperm.xlu0 %875, %v1172_v18   ;;  %v540_v6 = vmul.f32 %v527_v62, %v484_v1 }
 0x1dd   :  { %v445_v38 = vpop.xlane.xlu1 %444 }
 0x1de   :  { %v463_v39 = vadd.f32 %v445_v38, %v431_v35 }
 0x1e0   :  { %472 = vst.msk [vmem:[#allocation3 + $0x2] sm:$0x1] %vm17_vm1, %v463_v39  ;;  %v509_v39 = vperm.slane %v1175_v21, 0 }
 0x1e5   :  { %v442_v10 = vpop.xlane.xlu2 %441 }
 0x1e6   :  { %v462_v43 = vadd.f32 %v442_v10, %v430_v7  ;;  %v426_v10 = vld [vmem:[#allocation3 + $0x5] sm:$0x1] }
 0x1e7   :  { %v757_v47 = vld [vmem:[#allocation3 + $0x2] sm:$0x1]  ;;  %v434_v18 = vmul.f32 %v1122_v30, %v426_v10 }
 0x1e8   :  { %471 = vst.msk [vmem:[#allocation3 + $0x1] sm:$0x1] %vm17_vm1, %v462_v43  ;;  %909 = vrcp.f32 %v757_v47  ;;  %v537_v43 = vmul.f32 %v509_v39, %v481_v3 }
 0x1ec   :  { %v609_v46 = vpop.f32.mrf.mxu2 }
 0x1ed   :  { %v729_v51 = vadd.f32 %v609_v46, %v536_v49  ;;  %v483_v49 = vld [vmem:[#allocation4 + $0x5] sm:$0x1] }
 0x1ee   :  { %v910_v53 = vpop.eup %909  ;;  %v586_v25 = vpop.f32.mrf.mxu1  ;;  %v539_v50 = vmul.f32 %v521_v27, %v483_v49 }
 0x1ef   :  { %738 = vst.msk [vmem:[#allocation4 + $0x2] sm:$0x1] %vm34_vm4, %v729_v51  ;;  %v728_v54 = vadd.f32 %v586_v25, %v535_v52  ;;  %v439_v55 = vpop.xlane.xlu0 %438  ;;  %793 = vperm.xlu0 %875, %v910_v53   ;;  %v756_v56 = vld [vmem:[#allocation3 + $0x1] sm:$0x1]  ;;  %v485_v25 = vld [vmem:[#allocation4 + $0x7] sm:$0x1] }
 0x1f0   :  { %v461_v57 = vadd.f32 %v439_v55, %v429_v24  ;;  %911 = vrcp.f32 %v756_v56 }
 0x1f1   :  { %737 = vst.msk [vmem:[#allocation4 + $0x1] sm:$0x1] %vm34_vm4, %v728_v54 }
 0x1f2   :  { %470 = vst.msk [vmem:[#allocation3] sm:$0x1] %vm17_vm1, %v461_v57 }
 0x1f6   :  { %v912_v22 = vpop.eup %911 }
 0x1f7   :  { %v451_v61 = vpop.xlane.xlu0 %450  ;;  %787 = vperm.xlu1 %876, %v912_v22  }
 0x1f8   :  { %v465_v63 = vadd.f32 %v451_v61, %v433_v36  ;;  %v563_v0 = vpop.f32.mrf.mxu0  ;;  %v772_v2 = vld [vmem:[#allocation4 + $0x1] sm:$0x1] }
 0x1f9   :  { %v727_v42 = vadd.f32 %v563_v0, %v534_v23  ;;  %v755_v4 = vld [vmem:[#allocation3] sm:$0x1]  ;;  %v773_v23 = vld [vmem:[#allocation4 + $0x2] sm:$0x1] }
 0x1fa   :  { %474 = vst.msk [vmem:[#allocation3 + $0x4] sm:$0x1] %vm17_vm1, %v465_v63  ;;  %913 = vrcp.f32 %v755_v4 }
 0x1fb   :  { %736 = vst.msk [vmem:[#allocation4] sm:$0x1] %vm34_vm4, %v727_v42 }
 0x1fd   :  { %v701_v31 = vpop.f32.mrf.mxu2  ;;  %v448_v11 = vpop.xlane.xlu2 %447 }
 0x1fe   :  { %v733_v12 = vadd.f32 %v701_v31, %v540_v6  ;;  %v464_v13 = vadd.f32 %v448_v11, %v432_v8 }
 0x200   :  { %v914_v15 = vpop.eup %913  ;;  %742 = vst.msk [vmem:[#allocation4 + $0x6] sm:$0x1] %vm34_vm4, %v733_v12  ;;  %v655_v41 = vpop.f32.mrf.mxu0 }
 0x201   :  { %473 = vst.msk [vmem:[#allocation3 + $0x3] sm:$0x1] %vm17_vm1, %v464_v13  ;;  %v731_v17 = vadd.f32 %v655_v41, %v538_v14  ;;  %781 = vperm.xlu2 %874, %v914_v15   ;;  %v759_v20 = vld [vmem:[#allocation3 + $0x4] sm:$0x1] }
 0x202   :  { %915 = vrcp.f32 %v759_v20  ;;  %v771_v60 = vld [vmem:[#allocation4] sm:$0x1] }
 0x203   :  { %740 = vst.msk [vmem:[#allocation4 + $0x4] sm:$0x1] %vm34_vm4, %v731_v17 }
 0x205   :  { %v457_v28 = vpop.xlane.xlu2 %456  ;;  %v460_v34 = vpop.xlane.xlu0 %459 }
 0x206   :  { %v467_v35 = vadd.f32 %v457_v28, %v435_v29  ;;  %v468_v38 = vadd.f32 %v460_v34, %v436_v26 }
 0x207   :  { %v777_v31 = vld [vmem:[#allocation4 + $0x6] sm:$0x1] }
 0x208   :  { %v916_v40 = vpop.eup %915  ;;  %476 = vst.msk [vmem:[#allocation3 + $0x6] sm:$0x1] %vm17_vm1, %v467_v35  ;;  %v758_v7 = vld [vmem:[#allocation3 + $0x3] sm:$0x1] }
 0x209   :  { %477 = vst.msk [vmem:[#allocation3 + $0x7] sm:$0x1] %vm17_vm1, %v468_v38  ;;  %805 = vperm.xlu1 %876, %v916_v40   ;;  %917 = vrcp.f32 %v758_v7 }
 0x20a   :  { %v775_v14 = vld [vmem:[#allocation4 + $0x4] sm:$0x1] }
 0x20c   :  { %v632_v32 = vpop.f32.mrf.mxu3 }
 0x20d   :  { %v730_v44 = vadd.f32 %v632_v32, %v537_v43  ;;  %v454_v45 = vpop.xlane.xlu1 %453 }
 0x20e   :  { %v466_v47 = vadd.f32 %v454_v45, %v434_v18 }
 0x20f   :  { %v918_v48 = vpop.eup %917  ;;  %739 = vst.msk [vmem:[#allocation4 + $0x3] sm:$0x1] %vm34_vm4, %v730_v44  ;;  %v761_v21 = vld [vmem:[#allocation3 + $0x6] sm:$0x1] }
 0x210   :  { %475 = vst.msk [vmem:[#allocation3 + $0x5] sm:$0x1] %vm17_vm1, %v466_v47  ;;  %799 = vperm.xlu2 %874, %v918_v48   ;;  %919 = vrcp.f32 %v761_v21  ;;  %v762_v9 = vld [vmem:[#allocation3 + $0x7] sm:$0x1] }
 0x211   :  { %921 = vrcp.f32 %v762_v9 }
 0x214   :  { %v724_v56 = vpop.f32.mrf.mxu3 }
 0x216   :  { %v920_v46 = vpop.eup %919  ;;  %v678_v51 = vpop.f32.mrf.mxu1  ;;  %v774_v4 = vld [vmem:[#allocation4 + $0x3] sm:$0x1] }
 0x217   :  { %v922_v30 = vpop.eup %921  ;;  %v732_v52 = vadd.f32 %v678_v51, %v539_v50  ;;  %v760_v53 = vld [vmem:[#allocation3 + $0x5] sm:$0x1] }
 0x218   :  { %817 = vperm.xlu2 %874, %v920_v46   ;;  %823 = vperm.xlu1 %876, %v922_v30   ;;  %v531_v24 = vpop.permute.xlu0 %530  ;;  %923 = vrcp.f32 %v760_v53 }
 0x219   :  { %741 = vst.msk [vmem:[#allocation4 + $0x5] sm:$0x1] %vm34_vm4, %v732_v52  ;;  %v533_v54 = vperm.slane %v531_v24, 0 }
 0x21b   :  { %v541_v55 = vmul.f32 %v533_v54, %v485_v25 }
 0x21d   :  { %v734_v57 = vadd.f32 %v724_v56, %v541_v55 }
 0x21e   :  { %v924_v37 = vpop.eup %923 }
 0x21f   :  { %743 = vst.msk [vmem:[#allocation4 + $0x7] sm:$0x1] %vm34_vm4, %v734_v57  ;;  %811 = vperm.xlu0 %875, %v924_v37  }
 0x220   :  { %v776_v26 = vld [vmem:[#allocation4 + $0x5] sm:$0x1] }
 0x226   :  { %v778_v17 = vld [vmem:[#allocation4 + $0x7] sm:$0x1] }
 0x25b   :  { %v782_v58 = vpop.permute.xlu2 %781 }
 0x25c   :  { %v784_v59 = vperm.slane %v782_v58, 0 }
 0x25e   :  { %v827_v22 = vmul.f32 %v784_v59, %v771_v60 }
 0x260   :  { %835 = vst.msk [vmem:[%s1240_s3] sm:$0x1] %vm34_vm4, %v827_v22 }
 0x261   :  { %v794_v36 = vpop.permute.xlu0 %793 }
 0x262   :  { %v796_v61 = vperm.slane %v794_v36, 0 }
 0x264   :  { %v829_v62 = vmul.f32 %v796_v61, %v773_v23 }
 0x266   :  { %837 = vst.msk [vmem:[%s1240_s3 + $0x2] sm:$0x1] %vm34_vm4, %v829_v62 }
 0x269   :  { %v788_v63 = vpop.permute.xlu1 %787 }
 0x26a   :  { %v800_v0 = vpop.permute.xlu2 %799  ;;  %v790_v42 = vperm.slane %v788_v63, 0 }
 0x26b   :  { %v802_v1 = vperm.slane %v800_v0, 0 }
 0x26c   :  { %v828_v5 = vmul.f32 %v790_v42, %v772_v2 }
 0x26d   :  { %v830_v6 = vmul.f32 %v802_v1, %v774_v4 }
 0x26e   :  { %836 = vst.msk [vmem:[%s1240_s3 + $0x1] sm:$0x1] %vm34_vm4, %v828_v5 }
 0x26f   :  { %838 = vst.msk [vmem:[%s1240_s3 + $0x3] sm:$0x1] %vm34_vm4, %v830_v6 }
 0x272   :  { %v818_v8 = vpop.permute.xlu2 %817 }
 0x273   :  { %v820_v19 = vperm.slane %v818_v8, 0 }
 0x275   :  { %v833_v11 = vmul.f32 %v820_v19, %v777_v31 }
 0x277   :  { %841 = vst.msk [vmem:[%s1240_s3 + $0x6] sm:$0x1] %vm34_vm4, %v833_v11 }
 0x27b   :  { %v806_v12 = vpop.permute.xlu1 %805 }
 0x27c   :  { %v808_v13 = vperm.slane %v806_v12, 0 }
 0x27e   :  { %v831_v15 = vmul.f32 %v808_v13, %v775_v14 }
 0x280   :  { %839 = vst.msk [vmem:[%s1240_s3 + $0x4] sm:$0x1] %vm34_vm4, %v831_v15 }
 0x28a   :  { %v824_v41 = vpop.permute.xlu1 %823 }
 0x28b   :  { %v826_v16 = vperm.slane %v824_v41, 0 }
 0x28d   :  { %v834_v33 = vmul.f32 %v826_v16, %v778_v17 }
 0x28f   :  { %842 = vst.msk [vmem:[%s1240_s3 + $0x7] sm:$0x1] %vm34_vm4, %v834_v33 }
 0x291   :  { %v812_v20 = vpop.permute.xlu0 %811 }
 0x292   :  { %v814_v29 = vperm.slane %v812_v20, 0 }
 0x294   :  { %v832_v28 = vmul.f32 %v814_v29, %v776_v26 }
 0x296   :  { %840 = vst.msk [vmem:[%s1240_s3 + $0x5] sm:$0x1] %vm34_vm4, %v832_v28 }

</bundles_post_ra>
